<compile_context>
chip_gen: v7x
topology: tpu7x:2x2x1
jax: 0.10.0
libtpu: 0.0.40
codegen_flags: <defaults>
</compile_context>

<pallas_src>
import functools
import math

import jax
import jax.numpy as jnp
from jax.experimental import pallas as pl
from jax.experimental.pallas import tpu as pltpu


def _sim_matmul_kernel(x_ref, w_rep_ref, o_ref, *, precision):
    """G > 1: x (TILE_R, G) @ W_rep (G, G*D) -> lane-dense (TILE_R, G*D) row."""
    o_ref[...] = jnp.dot(
        x_ref[...],
        w_rep_ref[...],
        preferred_element_type=jnp.float32,
        precision=precision,
    ).astype(o_ref.dtype)


def _sim_broadcast_kernel(x_ref, w_ref, o_ref):
    """G == 1: plain VPU broadcast multiply (inf/NaN-exact)."""
    o_ref[...] = (x_ref[...] * w_ref[...]).astype(o_ref.dtype)


def _choose_group(m: int, d: int, *, max_lanes: int = 2048, max_g: int = 64):
    """Pick G so G*d is a multiple of 128 (lane-dense stores).

    Returns (g, needs_pad).  Prefers a G that divides M exactly (no padding),
    otherwise the smallest valid G with padding.  Falls back to G=1 (masked
    narrow stores) only when no valid G fits under the lane/row caps.
    """
    if d % 128 == 0:
        return 1, False                      # already lane-dense
    g0 = 128 // math.gcd(d, 128)             # smallest g with (g*d) % 128 == 0
    if g0 * d > max_lanes or g0 > max_g:
        return 1, False                      # rare fallback: masked stores
    best = 0
    g = g0
    while g * d <= max_lanes and g <= max_g:
        if m % g == 0:
            best = g
        g += g0
    if best:
        return best, False
    return g0, True                          # pad m up to a multiple of g0


def similarity_encoding(x, w_sim, *, target_tile_bytes=8 << 20):
    """x: (B, N) scores, w_sim: (D,) -> (B, N, D) == x[..., None] * w_sim."""
    b, n = x.shape
    d = w_sim.shape[0]
    dtype = jnp.result_type(x.dtype, w_sim.dtype)
    x = x.astype(dtype)
    w_sim = w_sim.astype(dtype)
    itemsize = jnp.dtype(dtype).itemsize
    sub = max(8, 32 // itemsize)             # sublane multiple: 8 f32 / 16 bf16 / 32 i8

    m = b * n
    g, needs_pad = _choose_group(m, d)

    x_flat = x.reshape(m)                    # contiguous reshape: free
    m_pad = m
    if needs_pad:
        m_pad = ((m + g - 1) // g) * g
        x_flat = jnp.pad(x_flat, (0, m_pad - m))   # < G rows of zeros: ~free

    r = m_pad // g                           # rows of the 2-D output view
    lane_w = g * d
    row_bytes = lane_w * itemsize

    # ~8 MiB output blocks; double-buffered they stay far below the 32 MiB
    # scoped-VMEM default of every generation (incl. v7x's 64 MiB physical).
    tile_r = max(1, target_tile_bytes // row_bytes)
    if tile_r >= r:
        tile_r = r
        if r > sub:
            # Keep >= 2 grid steps so megacore sharding / pipelining has work.
            tile_r = ((pl.cdiv(r, 2) + sub - 1) // sub) * sub
    else:
        tile_r = max(sub, (tile_r // sub) * sub)

    grid = (pl.cdiv(r, tile_r),)
    x2d = x_flat.reshape(r, g)               # contiguous reshape: free

    if g == 1:
        kernel = _sim_broadcast_kernel
        w_arg = w_sim.reshape(1, d)          # (1, D), VMEM-resident
        flops = m_pad * d
    else:
        # Replication matrix: W_rep[i, i*D + j] = w_sim[j]  (<= 64 x 2048 f32).
        w_arg = (jnp.eye(g, dtype=dtype)[:, :, None]
                 * w_sim[None, None, :]).reshape(g, lane_w)
        # HIGHEST precision keeps the single nonzero product per output lane at
        # full f32 accuracy on the MXU (DEFAULT would round operands to bf16).
        precision = (jax.lax.Precision.HIGHEST
                     if dtype == jnp.float32 else jax.lax.Precision.DEFAULT)
        kernel = functools.partial(_sim_matmul_kernel, precision=precision)
        flops = 2 * m_pad * g * d

    out2d = pl.pallas_call(
        kernel,
        out_shape=jax.ShapeDtypeStruct((r, lane_w), dtype),
        grid_spec=pltpu.PrefetchScalarGridSpec(
            num_scalar_prefetch=0,
            grid=grid,
            in_specs=[
                pl.BlockSpec((tile_r, g), lambda i: (i, 0)),       # score rows
                pl.BlockSpec(w_arg.shape, lambda i: (0, 0)),       # W_sim / W_rep
            ],
            out_specs=pl.BlockSpec((tile_r, lane_w), lambda i: (i, 0)),
        ),
        compiler_params=pltpu.CompilerParams(
            dimension_semantics=("parallel",),
            vmem_limit_bytes=32 * 1024 * 1024,
        ),
        cost_estimate=pl.CostEstimate(
            flops=flops,
            transcendentals=0,
            bytes_accessed=itemsize * (m_pad + w_arg.size + m_pad * d),
        ),
    )(x2d, w_arg)

    out = out2d.reshape(m_pad, d)            # contiguous reshape: free
    if m_pad != m:
        out = out[:m]                        # drop padding rows (tiny copy)
    return out.reshape(b, n, d)


if __name__ == "__main__":
    key = jax.random.PRNGKey(0)
    k_x, k_w = jax.random.split(key)

    # Shapes implied by the module: batch=2, n=8 scores, d_model=32.
    B, N, D = 2, 8, 32
    x = jax.random.normal(k_x, (B, N), dtype=jnp.float32)
    w_sim = jax.random.normal(k_w, (D,), dtype=jnp.float32)   # learnable param (randn init)

    out = jax.block_until_ready(similarity_encoding(x, w_sim))
    ref = x[:, :, None] * w_sim[None, None, :]
    assert out.shape == (B, N, D)
    assert jnp.allclose(out, ref, atol=1e-5, rtol=1e-5), "mismatch vs reference"

    # Extra coverage (all reuse the same wrapper/kernels):
    #   (2, 4168, 32)  multi-block ragged grid, MXU replication path
    #   (3, 7, 32)     M not divisible by any lane-dense group -> padding path
    #   (2, 8, 256)    D % 128 == 0 -> VPU broadcast path
    #   (2, 64, 100)   replication too wide -> G=1 masked-store fallback
    for (b2, n2, d2) in [(2, 4168, 32), (3, 7, 32), (2, 8, 256), (2, 64, 100)]:
        kx2, kw2 = jax.random.split(jax.random.PRNGKey(1))
        x2 = jax.random.normal(kx2, (b2, n2), dtype=jnp.float32)
        w2 = jax.random.normal(kw2, (d2,), dtype=jnp.float32)
        o2 = jax.block_until_ready(similarity_encoding(x2, w2))
        r2 = x2[:, :, None] * w2[None, None, :]
        assert o2.shape == (b2, n2, d2)
        assert jnp.allclose(o2, r2, atol=1e-5, rtol=1e-5), f"mismatch for {(b2, n2, d2)}"

    print("KERNEL_OK")
</pallas_src>

<mosaic_0001>
module attributes {stable_mosaic.version = 11 : i64} {
  func.func @_sim_matmul_kernel(%arg0: i32, %arg1: memref<1x16xf32, #tpu.memory_space<vmem>>, %arg2: memref<16x512xf32, #tpu.memory_space<vmem>>, %arg3: memref<1x512xf32, #tpu.memory_space<vmem>>) attributes {dimension_semantics = [#tpu.dimension_semantics<parallel>], iteration_bounds = array<i64: 1>, scalar_prefetch = 0 : i64, scratch_operands = 0 : i64, tpu.core_type = #tpu.core_type<tc>, window_params = [{transform_indices = @transform_0, window_bounds = array<i64: 1, 16>}, {pipeline_mode = #tpu.pipeline_mode<synchronous>, transform_indices = @transform_1, window_bounds = array<i64: 16, 512>}, {transform_indices = @transform_2, window_bounds = array<i64: 1, 512>}]} {
    %c0 = arith.constant 0 : index
    %c0_0 = arith.constant 0 : index
    %0 = vector.load %arg1[%c0, %c0_0] : memref<1x16xf32, #tpu.memory_space<vmem>>, vector<1x16xf32>
    %c0_1 = arith.constant 0 : index
    %c0_2 = arith.constant 0 : index
    %1 = vector.load %arg2[%c0_1, %c0_2] : memref<16x512xf32, #tpu.memory_space<vmem>>, vector<16x512xf32>
    %cst = arith.constant dense<0.000000e+00> : vector<1x512xf32>
    %2 = tpu.matmul %0, %1, %cst {dimension_numbers = #tpu.dot_dimension_numbers<[1], [0], [0], [1], [0, 0, 1, 1], [], []>, precision = #tpu.contract_precision<fp32>} : vector<1x16xf32>, vector<16x512xf32>, vector<1x512xf32> -> vector<1x512xf32>
    %c0_3 = arith.constant 0 : index
    %c0_4 = arith.constant 0 : index
    %3 = vector.load %arg3[%c0_3, %c0_4] : memref<1x512xf32, #tpu.memory_space<vmem>>, vector<1x512xf32>
    tpu.vector_store %arg3[%c0_3, %c0_4], %2 {strides = array<i32>} : memref<1x512xf32, #tpu.memory_space<vmem>>, vector<1x512xf32>,
    return
  }
  func.func @transform_0(%arg0: i32) -> (i32, i32) {
    %c0_i32 = arith.constant 0 : i32
    %c0_i32_0 = arith.constant 0 : i32
    return %arg0, %c0_i32 : i32, i32
  }
  func.func @transform_1(%arg0: i32) -> (i32, i32) {
    %c0_i32 = arith.constant 0 : i32
    %c0_i32_0 = arith.constant 0 : i32
    %c0_i32_1 = arith.constant 0 : i32
    return %c0_i32, %c0_i32_0 : i32, i32
  }
  func.func @transform_2(%arg0: i32) -> (i32, i32) {
    %c0_i32 = arith.constant 0 : i32
    %c0_i32_0 = arith.constant 0 : i32
    return %arg0, %c0_i32 : i32, i32
  }
}

</mosaic_0001>

<bundles_post_ra>
// kernel: tpu_custom_call.1
= control target key start
LH: loop header
LB: loop body
LE: loop exit
PB: predicated region body
PF: predicated region fallthrough
CT: control target
= control target key end

     0   :  { %7 = vsyncpa [#allocation3], 0  ;;  %s1376_s0 = inlined_call_operand.hbm [shape: f32[1,16], index: 0, kind: input, shape index: {}]   ;;  %s1377_s1 = inlined_call_operand.hbm [shape: f32[16,512], index: 1, kind: input, shape index: {}]   ;;  %s1378_s2 = inlined_call_operand.hbm [shape: f32[1,512], index: 2, kind: output, shape index: {}]  }
   0x1   :  { %8 = vsyncpa [#allocation6], 0 }
   0x2   :  { %9 = vsyncpa [#allocation4], 0  ;;  %s1230_s9 = smov [#allocation2]   ;;  %s1231_s11 = smov [#allocation5]  }
   0x3   :  { %s16_s10 = sshll.u32 %s1230_s9, 4  ;;  %s25_s12 = sshll.u32 %s1231_s11, 4  ;;  %s17_s10 = int_to_ptr.vmem [resolvable:$true] %s16_s10  ;;  %s1252_s12 = int_to_ptr.vmem [resolvable:$true] %s25_s12 }
   0x4   :  { %s1158_s15 = scalar_lea.hbm %s1376_s0, 16 }
   0x5   :  { %p1159_p0 = scmp.ne.s32.totalorder %s1376_s0, %s1158_s15  ;;  %p1162_p1 = scmp.lt.u32.totalorder %s1158_s15, %s1376_s0 }
   0x7   :  { %p1164_p2 = pnand %p1162_p1, %p1159_p0 }
   0x9   :  { %1167 = shalt.err (!%p1164_p2)
}
   0xa   :  { %s1168_s20 = scalar_lea.vmem %s17_s10, 16  ;;  %s1172_s21 = scalar_lea.vmem %s17_s10, 32 }
   0xb   :  { %p1169_p3 = scmp.ne.s32.totalorder %s17_s10, %s1168_s20  ;;  %p1173_p4 = scmp.lt.s32.totalorder %s17_s10, %s17_s10 }
   0xc   :  { %p1174_p5 = scmp.lt.s32.totalorder %s1172_s21, %s1168_s20 }
   0xe   :  { %p1175_p6 = por %p1174_p5, %p1173_p4 }
  0x10   :  { %p1176_p7 = pnand %p1175_p6, %p1169_p3 }
  0x12   :  { %1179 = shalt.err (!%p1176_p7)
}
  0x13   :  { %19 = dma.hbm_to_vmem [thread:$0]  %s1376_s0, 16, %s17_s10, [#allocation3]  }
  0x14   :  { %s1180_s26 = scalar_lea.hbm %s1377_s1, 1024 }
  0x15   :  { %p1181_p8 = scmp.ne.s32.totalorder %s1377_s1, %s1180_s26  ;;  %p1184_p9 = scmp.lt.u32.totalorder %s1180_s26, %s1377_s1 }
  0x17   :  { %p1186_p10 = pnand %p1184_p9, %p1181_p8 }
  0x19   :  { %1189 = shalt.err (!%p1186_p10)
}
  0x1a   :  { %s1190_s3 = scalar_lea.vmem %s1252_s12, 1024  ;;  %p1195_p12 = scmp.lt.s32.totalorder %s1252_s12, %s1252_s12 }
  0x1b   :  { %p1191_p11 = scmp.ne.s32.totalorder %s1252_s12, %s1190_s3  ;;  %p1196_p13 = scmp.lt.s32.totalorder %s1190_s3, %s1190_s3 }
  0x1d   :  { %p1197_p0 = por %p1196_p13, %p1195_p12 }
  0x1f   :  { %p1198_p1 = pnand %p1197_p0, %p1191_p11 }
  0x21   :  { %1201 = shalt.err (!%p1198_p1)
}
  0x22   :  { %s1232_s0 = smov 512   ;;  %s1233_s4 = smov 32  }
  0x23   :  { %31 = dma.hbm_to_vmem [thread:$0]  %s1377_s1, 1024, %s1252_s12, [#allocation6], %s1232_s0, %s1232_s0, %s1233_s4  }
  0x24   :  { %1224 = dma.done.wait [#allocation3], 16  }
  0x25   :  { %1225 = vsyncadd [#allocation3], 4294967280 }
  0x26   :  { %1226 = dma.done.wait [#allocation6], 1024  }
  0x27   :  { %1227 = vsyncadd [#allocation6], 4294966272  ;;  %v1234_v0 = vmov 0.0   ;;  %v40_v1 = vld [vmem:[#allocation5 + $0x8] sm:$0xff]  ;;  %v42_v3 = vld [vmem:[#allocation5 + $0x18] sm:$0xff]  ;;  %vm47_vm0 = vcmask 130048  }
  0x28   :  { %119 = vmatprep.mubr.f32.mxu0 %v1234_v0  ;;  %610 = vmatprep.mubr.f32.mxu1 %v1234_v0  ;;  %v44_v2 = vld [vmem:[#allocation5 + $0x28] sm:$0xff]  ;;  %v51_v4 = vand.u32 4294901760, %v40_v1  ;;  %v46_v6 = vld [vmem:[#allocation5 + $0x38] sm:$0xff]  ;;  %v542_v7 = vand.u32 4294901760, %v42_v3  ;;  %v39_v8 = vld [vmem:[#allocation5] sm:$0xff]  ;;  %s1236_s1 = smov [#allocation7]  }
  0x29   :  { %v55_v5 = vand.u32 4294901760, %v44_v2  ;;  %v43_v9 = vld [vmem:[#allocation5 + $0x20] sm:$0xff]  ;;  %v546_v10 = vand.u32 4294901760, %v46_v6  ;;  %v53_v11 = vand.u32 4294901760, %v39_v8  ;;  %v41_v13 = vld [vmem:[#allocation5 + $0x10] sm:$0xff]  ;;  %s1073_s7 = sshll.u32 %s1236_s1, 4  ;;  %s1074_s7 = int_to_ptr.vmem [resolvable:$true] %s1073_s7 }
  0x2a   :  { %v57_v12 = vand.u32 4294901760, %v43_v9  ;;  %v45_v14 = vld [vmem:[#allocation5 + $0x30] sm:$0xff]  ;;  %v1287_v16 = vsub.f32 %v40_v1, %v51_v4  ;;  %v1291_v18 = vsub.f32 %v42_v3, %v542_v7  ;;  %v38_v19 = vld [vmem:[#allocation2] sm:$0x1]  ;;  %v544_v25 = vand.u32 4294901760, %v41_v13  ;;  %s1202_s8 = scalar_lea.vmem %s1074_s7, 64  ;;  %p1207_p3 = scmp.lt.s32.totalorder %s1074_s7, %s1074_s7 }
  0x2b   :  { %v1285_v15 = vpack.c.bf16 %v55_v5, %v51_v4  ;;  %v1289_v17 = vsub.f32 %v44_v2, %v55_v5  ;;  %v1293_v20 = vpack.c.bf16 %v546_v10, %v542_v7  ;;  %v1295_v21 = vsub.f32 %v46_v6, %v546_v10  ;;  %p1203_p2 = scmp.ne.s32.totalorder %s1074_s7, %s1202_s8  ;;  %p1208_p4 = scmp.lt.s32.totalorder %s1202_s8, %s1202_s8 }
  0x2c   :  { %v1297_v22 = vpack.c.bf16 %v57_v12, %v53_v11  ;;  %v1299_v23 = vsub.f32 %v39_v8, %v53_v11  ;;  %v1302_v24 = vsub.f32 %v43_v9, %v57_v12  ;;  %v548_v26 = vand.u32 4294901760, %v45_v14 }
  0x2d   :  { %1084 = vmatprep.subr.bf16.mxu0 %v1285_v15  ;;  %v49_v27 = vsel %vm47_vm0, %v38_v19, 0  ;;  %1108 = vmatprep.subr.bf16.mxu1 %v1293_v20  ;;  %v133_v29 = vand.u32 4294901760, %v1287_v16  ;;  %v145_v30 = vand.u32 4294901760, %v1289_v17  ;;  %v624_v31 = vand.u32 4294901760, %v1291_v18  ;;  %p1209_p5 = por %p1208_p4, %p1207_p3 }
  0x2e   :  { %1086 = vmatpush1.bf16.msra.mxu0 %v1297_v22  ;;  %v1306_v28 = vand.u32 4294901760, %v49_v27  ;;  %v1311_v32 = vpack.c.bf16 %v548_v26, %v544_v25  ;;  %v1313_v33 = vsub.f32 %v41_v13, %v544_v25  ;;  %v1315_v34 = vsub.f32 %v45_v14, %v548_v26 }
  0x2f   :  { %v636_v35 = vand.u32 4294901760, %v1295_v21  ;;  %v134_v37 = vsub.f32 %v1287_v16, %v133_v29  ;;  %v146_v38 = vsub.f32 %v1289_v17, %v145_v30  ;;  %v625_v39 = vsub.f32 %v1291_v18, %v624_v31  ;;  %p1210_p6 = pnand %p1209_p5, %p1203_p2 }
  0x30   :  { %v121_v36 = vsub.f32 %v49_v27, %v1306_v28  ;;  %1110 = vmatpush1.bf16.msra.mxu1 %v1311_v32  ;;  %v139_v41 = vand.u32 4294901760, %v1299_v23  ;;  %v151_v42 = vand.u32 4294901760, %v1302_v24  ;;  %v630_v43 = vand.u32 4294901760, %v1313_v33 }
  0x31   :  { %v637_v40 = vsub.f32 %v1295_v21, %v636_v35  ;;  %v135_v45 = vand.u32 4294901760, %v134_v37  ;;  %v147_v46 = vand.u32 4294901760, %v146_v38  ;;  %v626_v47 = vand.u32 4294901760, %v625_v39 }
  0x32   :  { %v122_v44 = vand.u32 4294901760, %v121_v36  ;;  %v140_v49 = vsub.f32 %v1299_v23, %v139_v41  ;;  %v152_v50 = vsub.f32 %v1302_v24, %v151_v42  ;;  %v631_v51 = vsub.f32 %v1313_v33, %v630_v43 }
  0x33   :  { %v638_v48 = vand.u32 4294901760, %v637_v40  ;;  %v1087_v53 = vpack.c.bf16 %v147_v46, %v135_v45  ;;  %v642_v54 = vand.u32 4294901760, %v1315_v34  ;;  %v1091_v61 = vpack.c.bf16 %v1289_v17, %v1287_v16 }
  0x34   :  { %v123_v52 = vsub.f32 %v121_v36, %v122_v44  ;;  %v141_v56 = vand.u32 4294901760, %v140_v49  ;;  %v153_v57 = vand.u32 4294901760, %v152_v50  ;;  %v632_v59 = vand.u32 4294901760, %v631_v51 }
  0x35   :  { %v1111_v55 = vpack.c.bf16 %v638_v48, %v626_v47  ;;  %1088 = vmatprep.subr.bf16.mxu0 %v1087_v53  ;;  %v643_v60 = vsub.f32 %v1315_v34, %v642_v54  ;;  %v1115_v1 = vpack.c.bf16 %v1295_v21, %v1291_v18  ;;  %v1093_v3 = vpack.c.bf16 %v1302_v24, %v1299_v23 }
  0x36   :  { %v124_v58 = vand.u32 4294901760, %v123_v52  ;;  %v1089_v62 = vpack.c.bf16 %v153_v57, %v141_v56  ;;  %v1117_v4 = vpack.c.bf16 %v1315_v34, %v1313_v33  ;;  %v1099_v5 = vpack.c.bf16 %v145_v30, %v133_v29 }
  0x37   :  { %1112 = vmatprep.subr.bf16.mxu1 %v1111_v55  ;;  %v644_v63 = vand.u32 4294901760, %v643_v60  ;;  %v1123_v6 = vpack.c.bf16 %v636_v35, %v624_v31  ;;  %v1101_v7 = vpack.c.bf16 %v151_v42, %v139_v41  ;;  %v1125_v8 = vpack.c.bf16 %v642_v54, %v630_v43 }
  0x38   :  { %125 = vmatmul.mubr.f32.vlgmr.msra.gmra.mrb[0].mxu0 %v124_v58  ;;  %616 = vmatmul.mubr.f32.vlgmr.msra.gmra.mrb[0].mxu1 %v124_v58  ;;  %v1235_v9 = vmov 1966171168   ;;  %v1042_v11 = vlaneseq }
  0x39   :  { %1090 = vmatpush1.bf16.msra.mxu0 %v1089_v62  ;;  %215 = vmatprep.mubr.f32.mxu0 %v1234_v0  ;;  %v1113_v2 = vpack.c.bf16 %v644_v63, %v632_v59  ;;  %v1040_v10 = vunpack.c.l.s4 %v1235_v9 }
  0x3a   :  { %706 = vmatprep.mubr.f32.mxu1 %v1234_v0  ;;  %1092 = vmatprep.subr.bf16.mxu0 %v1091_v61  ;;  %v1043_v13 = vshrl.u32 %v1042_v11, 7  ;;  %vm1064_vm1 = vcmp.lt.s32.totalorder %v1042_v11, 512 }
  0x3b   :  { %1114 = vmatpush1.bf16.msra.mxu1 %v1113_v2  ;;  %v1041_v12 = vunpack.c.0.s8 %v1040_v10 }
  0x3c   :  { %1116 = vmatprep.subr.bf16.mxu1 %v1115_v1 }
  0x3d   :  { %v1044_v16 = vsub.s32 %v1041_v12, %v1043_v13 }
  0x40   :  { %217 = vmatmul.mubr.f32.vlgmr.msra.gmra.mrb[0].mxu0 %v1306_v28  ;;  %708 = vmatmul.mubr.f32.vlgmr.msra.gmra.mrb[0].mxu1 %v1306_v28 }
  0x41   :  { %1094 = vmatpush1.bf16.msra.mxu0 %v1093_v3  ;;  %1118 = vmatpush1.bf16.msra.mxu1 %v1117_v4 }
  0x42   :  { %295 = vmatprep.mubr.f32.mxu0 %v1234_v0  ;;  %786 = vmatprep.mubr.f32.mxu1 %v1234_v0 }
  0x43   :  { %1096 = vmatprep.subr.bf16.mxu0 %v1285_v15  ;;  %1120 = vmatprep.subr.bf16.mxu1 %v1293_v20 }
  0x48   :  { %298 = vmatmul.mubr.f32.vlgmr.msra.gmra.mrb[0].mxu0 %v121_v36  ;;  %789 = vmatmul.mubr.f32.vlgmr.msra.gmra.mrb[0].mxu1 %v121_v36 }
  0x49   :  { %1098 = vmatpush1.bf16.msra.mxu0 %v1297_v22  ;;  %1122 = vmatpush1.bf16.msra.mxu1 %v1311_v32 }
  0x4a   :  { %372 = vmatprep.mubr.f32.mxu0 %v1234_v0  ;;  %863 = vmatprep.mubr.f32.mxu1 %v1234_v0 }
  0x4b   :  { %1100 = vmatprep.subr.bf16.mxu0 %v1099_v5  ;;  %1124 = vmatprep.subr.bf16.mxu1 %v1123_v6 }
  0x50   :  { %376 = vmatmul.mubr.f32.vlgmr.msra.gmra.mrb[0].mxu0 %v122_v44  ;;  %867 = vmatmul.mubr.f32.vlgmr.msra.gmra.mrb[0].mxu1 %v122_v44 }
  0x51   :  { %1102 = vmatpush1.bf16.msra.mxu0 %v1101_v7  ;;  %1126 = vmatpush1.bf16.msra.mxu1 %v1125_v8 }
  0x52   :  { %458 = vmatprep.mubr.f32.mxu0 %v1234_v0  ;;  %949 = vmatprep.mubr.f32.mxu1 %v1234_v0 }
  0x53   :  { %1104 = vmatprep.subr.bf16.mxu0 %v1285_v15  ;;  %1128 = vmatprep.subr.bf16.mxu1 %v1293_v20 }
  0x58   :  { %460 = vmatmul.mubr.f32.vlgmr.msra.gmra.mrb[0].mxu0 %v1306_v28  ;;  %951 = vmatmul.mubr.f32.vlgmr.msra.gmra.mrb[0].mxu1 %v1306_v28 }
  0x59   :  { %1106 = vmatpush1.bf16.msra.mxu0 %v1297_v22  ;;  %1130 = vmatpush1.bf16.msra.mxu1 %v1311_v32 }
  0x5a   :  { %534 = vmatprep.mubr.f32.mxu0 %v1234_v0  ;;  %1025 = vmatprep.mubr.f32.mxu1 %v1234_v0 }
  0x60   :  { %536 = vmatmul.mubr.f32.vlgmr.msra.gmra.mrb[0].mxu0 %v1306_v28  ;;  %1027 = vmatmul.mubr.f32.vlgmr.msra.gmra.mrb[0].mxu1 %v1306_v28 }
 0x133   :  { %v537_v14 = vpop.f32.mrb[0].mxu0  ;;  %v1028_v15 = vpop.f32.mrb[0].mxu1 }
 0x134   :  { %v539_v17 = vpop.f32.mrb[1].mxu0  ;;  %v1030_v18 = vpop.f32.mrb[1].mxu1 }
 0x135   :  { %v1037_v19 = vcombine.low %v537_v14, %v539_v17  ;;  %v1038_v20 = vcombine.low %v1028_v15, %v1030_v18 }
 0x137   :  { %v1045_v21 = vrot.slane %v1037_v19, %v1044_v16  ;;  %v1052_v22 = vrot.slane %v1038_v20, %v1044_v16 }
 0x139   :  { %v1053_v0 = vcombine.low %v1045_v21, %v1052_v22 }
 0x13b   :  { %v1060_v23 = vrot.slane %v1053_v0, %v1044_v16 }
 0x13d   :  { %1066 = vst.msk [vmem:[#allocation7] sm:$0xf] %vm1064_vm1, %v1060_v23 }
 0x13e   :  { %1213 = shalt.err (!%p1210_p6)
}
 0x13f   :  { %s1214_s11 = scalar_lea.hbm %s1378_s2, 64 }
 0x140   :  { %p1215_p7 = scmp.ne.s32.totalorder %s1378_s2, %s1214_s11  ;;  %p1218_p8 = scmp.lt.u32.totalorder %s1214_s11, %s1378_s2 }
 0x142   :  { %p1220_p9 = pnand %p1218_p8, %p1215_p7 }
 0x144   :  { %1223 = shalt.err (!%p1220_p9)
}
 0x145   :  { %1076 = dma.vmem_to_hbm [thread:$0]  %s1074_s7, 64, %s1378_s2, [#allocation4]  }
 0x146   :  { %1228 = dma.done.wait [#allocation4], 64  }
 0x147   :  { %1229 = vsyncadd [#allocation4], 4294967232 }
 0x148   :  { %1080 = vsyncpa [#allocation3], 1 }
 0x149   :  { %1081 = vsyncpa [#allocation6], 1 }
 0x14a   :  { %1082 = vsyncpa [#allocation4], 1 }

</bundles_post_ra>
